<compile_context>
chip_gen: v7x
topology: tpu7x:2x2x1
jax: 0.10.0
libtpu: 0.0.40
codegen_flags: <defaults>
</compile_context>

<pallas_src>
import math
import functools

import jax
import jax.numpy as jnp
import numpy as np
from jax.experimental import pallas as pl
from jax.experimental.pallas import tpu as pltpu

D_MODEL = 64
NUM_HEADS = 4
HEAD_SIZE = D_MODEL // NUM_HEADS
CONTEXT_LENGTH = 16


def _mha_kernel(x_ref, wqkv_ref, wp_ref, bp_ref, o_ref, *, seq_len):
    """Causal multi-head attention over the rows of this grid step.

    x_ref    : (R, C)        f32   R = (#sequences in this step) * seq_len
    wqkv_ref : (H, C, 3*Hs)  bf16  fused per-head [q | k | v] weights
    wp_ref   : (H, Hs, C)    bf16  output projection, split per head
    bp_ref   : (1, C)        f32   projection bias
    o_ref    : (R, C)        f32
    """
    R = x_ref.shape[0]
    H, Hs, C = NUM_HEADS, HEAD_SIZE, D_MODEL
    scale = 1.0 / math.sqrt(Hs)

    x = x_ref[...]                                   # f32 (R, C)
    xb = x.astype(jnp.bfloat16)
    x_h = jnp.broadcast_to(xb[None], (H, R, C))      # heads as leading batch dim

    # Fused QKV: one head-batched MXU op instead of 3*H tiny dots.
    qkv = jnp.einsum("hrc,hcm->hrm", x_h, wqkv_ref[...],
                     preferred_element_type=jnp.float32)        # (H, R, 3*Hs)
    q = qkv[:, :, 0:Hs]
    k = qkv[:, :, Hs:2 * Hs]
    v = qkv[:, :, 2 * Hs:3 * Hs]

    # All-head scores; contract on last axes (no transposed sub-tile materialized).
    s = jnp.einsum("hqd,hkd->hqk",
                   q.astype(jnp.bfloat16), k.astype(jnp.bfloat16),
                   preferred_element_type=jnp.float32) * scale  # (H, R, R) f32

    # Causal mask; if several sequences are packed into this step, also
    # block-diagonalize so different batch elements never attend to each other.
    row = jax.lax.broadcasted_iota(jnp.int32, (R, R), 0)
    col = jax.lax.broadcasted_iota(jnp.int32, (R, R), 1)
    mask = row >= col
    if R > seq_len:
        mask = mask & ((row // seq_len) == (col // seq_len))
    s = jnp.where(mask[None], s, -1e30)              # f32 fill, stable with max-sub

    # Softmax in f32; normalization via approx reciprocal (EUP), applied after p@V.
    s = s - jnp.max(s, axis=-1, keepdims=True)
    p = jnp.exp(s)
    denom = jnp.sum(p, axis=-1, keepdims=True)       # (H, R, 1)
    ov = jnp.einsum("hqk,hkd->hqd",
                    p.astype(jnp.bfloat16), v.astype(jnp.bfloat16),
                    preferred_element_type=jnp.float32)         # (H, R, Hs)
    ov = ov * pl.reciprocal(denom, approx=True)

    # Head-concat followed by the (C, C) projection == per-head (Hs, C)
    # projection summed over heads; avoids the lane-offset concatenate.
    proj = jnp.einsum("hrd,hdc->hrc",
                      ov.astype(jnp.bfloat16), wp_ref[...],
                      preferred_element_type=jnp.float32)       # (H, R, C)
    o_ref[...] = jnp.sum(proj, axis=0) + bp_ref[...]


def multi_head_attention(x, params, *, batch_splits=2):
    """x: (B, T, C) float32. params: dict of weights (see init_params)."""
    B, T, C = x.shape
    assert C == D_MODEL and T <= CONTEXT_LENGTH
    H, Hs = NUM_HEADS, HEAD_SIZE

    # Fuse per-head q/k/v into one (H, C, 3*Hs) bf16 tensor; split the output
    # projection per head as (H, Hs, C) bf16.  bf16 operands halve weight DMA
    # and use the native MXU path; accumulation stays f32 inside the kernel.
    wq, wk, wv = params["wq"], params["wk"], params["wv"]
    wqkv = jnp.stack(
        [jnp.concatenate([wq[:, h * Hs:(h + 1) * Hs],
                          wk[:, h * Hs:(h + 1) * Hs],
                          wv[:, h * Hs:(h + 1) * Hs]], axis=-1)
         for h in range(H)],
        axis=0).astype(jnp.bfloat16)                            # (H, C, 3*Hs)
    wp_r = params["wp"].reshape(H, Hs, C).astype(jnp.bfloat16)  # (H, Hs, C)
    bp = params["bp"].astype(jnp.float32)                       # (1, C)

    # Flatten the batch; use at most 2 "parallel" grid steps over batch halves
    # (dual TensorCores on v7x; on v5e/v6e the extra step is ~0.35 us).
    splits = batch_splits if (B >= batch_splits and B % batch_splits == 0) else 1
    rows = (B // splits) * T
    x2d = x.reshape(B * T, C)

    out2d = pl.pallas_call(
        functools.partial(_mha_kernel, seq_len=T),
        out_shape=jax.ShapeDtypeStruct((B * T, C), jnp.float32),
        grid=(splits,),
        in_specs=[
            pl.BlockSpec((rows, C), lambda i: (i, 0)),
            pl.BlockSpec(wqkv.shape, lambda i: (0, 0, 0)),   # VMEM-resident weights
            pl.BlockSpec(wp_r.shape, lambda i: (0, 0, 0)),
            pl.BlockSpec(bp.shape, lambda i: (0, 0)),
        ],
        out_specs=pl.BlockSpec((rows, C), lambda i: (i, 0)),
        compiler_params=pltpu.CompilerParams(
            dimension_semantics=("parallel",)),
    )(x2d, wqkv, wp_r, bp)
    return out2d.reshape(B, T, C)


def init_params(key):
    """Deterministic synthetic parameters with the shapes the module implies."""
    keys = jax.random.split(key, 5)
    C = D_MODEL

    def w(k, shape, scale=0.05):
        return (scale * jax.random.normal(k, shape)).astype(jnp.float32)

    return {
        # per-head Linear(d_model, head_size, bias=False), concatenated along
        # the output axis -> (C, C) in x @ W orientation.
        "wq": w(keys[0], (C, C)),
        "wk": w(keys[1], (C, C)),
        "wv": w(keys[2], (C, C)),
        # projection Linear(d_model, d_model) with bias.
        "wp": w(keys[3], (C, C)),
        "bp": w(keys[4], (1, C)),
    }


def mha_ref(x, p):
    """Pure-f32 JAX reference (eval mode, dropout = identity)."""
    B, T, C = x.shape
    H, Hs = NUM_HEADS, HEAD_SIZE
    q = x @ p["wq"]
    k = x @ p["wk"]
    v = x @ p["wv"]
    qh = q.reshape(B, T, H, Hs).transpose(0, 2, 1, 3)
    kh = k.reshape(B, T, H, Hs).transpose(0, 2, 1, 3)
    vh = v.reshape(B, T, H, Hs).transpose(0, 2, 1, 3)
    s = jnp.einsum("bhqd,bhkd->bhqk", qh, kh) / math.sqrt(Hs)
    mask = jnp.tril(jnp.ones((T, T), bool))
    s = jnp.where(mask, s, -jnp.inf)
    w_ = jax.nn.softmax(s, axis=-1)
    o = jnp.einsum("bhqk,bhkd->bhqd", w_, vh).transpose(0, 2, 1, 3).reshape(B, T, C)
    return o @ p["wp"] + p["bp"]


if __name__ == "__main__":
    key = jax.random.PRNGKey(0)
    kx, kp = jax.random.split(key)

    B, T = 2, 8   # seq = 8 <= context_length = 16
    x = jax.random.normal(kx, (B, T, D_MODEL), dtype=jnp.float32)
    params = init_params(kp)

    y = multi_head_attention(x, params)
    y = jax.block_until_ready(y)

    y_ref = mha_ref(x, params)
    # Kernel uses bf16 MXU operands (f32 accumulation) + approx reciprocal, so
    # allow ~1% deviation vs the pure-f32 reference.
    np.testing.assert_allclose(np.asarray(y), np.asarray(y_ref),
                               rtol=5e-2, atol=1e-2)
    print("KERNEL_OK")
</pallas_src>

<mosaic_0001>
module attributes {stable_mosaic.version = 11 : i64} {
  func.func @_mha_kernel(%arg0: i32, %arg1: memref<8x64xf32, #tpu.memory_space<vmem>>, %arg2: memref<4x64x48xbf16, #tpu.memory_space<vmem>>, %arg3: memref<4x16x64xbf16, #tpu.memory_space<vmem>>, %arg4: memref<1x64xf32, #tpu.memory_space<vmem>>, %arg5: memref<8x64xf32, #tpu.memory_space<vmem>>) attributes {dimension_semantics = [#tpu.dimension_semantics<parallel>], iteration_bounds = array<i64: 2>, scalar_prefetch = 0 : i64, scratch_operands = 0 : i64, tpu.core_type = #tpu.core_type<tc>, window_params = [{transform_indices = @transform_0, window_bounds = array<i64: 8, 64>}, {pipeline_mode = #tpu.pipeline_mode<synchronous>, transform_indices = @transform_1, window_bounds = array<i64: 4, 64, 48>}, {pipeline_mode = #tpu.pipeline_mode<synchronous>, transform_indices = @transform_2, window_bounds = array<i64: 4, 16, 64>}, {pipeline_mode = #tpu.pipeline_mode<synchronous>, transform_indices = @transform_3, window_bounds = array<i64: 1, 64>}, {transform_indices = @transform_4, window_bounds = array<i64: 8, 64>}]} {
    %c0 = arith.constant 0 : index
    %c0_0 = arith.constant 0 : index
    %0 = vector.load %arg1[%c0, %c0_0] : memref<8x64xf32, #tpu.memory_space<vmem>>, vector<8x64xf32>
    %1 = arith.truncf %0 : vector<8x64xf32> to vector<8x64xbf16>
    %2 = vector.shape_cast %1 : vector<8x64xbf16> to vector<1x8x64xbf16>
    %3 = vector.shape_cast %2 : vector<1x8x64xbf16> to vector<1x8x64xbf16>
    %4 = vector.broadcast %3 : vector<1x8x64xbf16> to vector<4x8x64xbf16>
    %c0_1 = arith.constant 0 : index
    %c0_2 = arith.constant 0 : index
    %c0_3 = arith.constant 0 : index
    %5 = vector.load %arg2[%c0_1, %c0_2, %c0_3] : memref<4x64x48xbf16, #tpu.memory_space<vmem>>, vector<4x64x48xbf16>
    "tpu.trace_start"() <{level = 10 : i32, message = "hrc,hcm->hrm"}> : () -> ()
    %cst = arith.constant dense<0.000000e+00> : vector<4x8x48xf32>
    %6 = tpu.matmul %4, %5, %cst {dimension_numbers = #tpu.dot_dimension_numbers<[2], [1], [1], [2], [0, 0, 0, 1, 1, 2], [0], [0]>} : vector<4x8x64xbf16>, vector<4x64x48xbf16>, vector<4x8x48xf32> -> vector<4x8x48xf32>
    "tpu.trace_stop"() : () -> ()
    %7 = vector.extract_strided_slice %6 {offsets = [0, 0, 0], sizes = [4, 8, 16], strides = [1, 1, 1]} : vector<4x8x48xf32> to vector<4x8x16xf32>
    %8 = vector.extract_strided_slice %6 {offsets = [0, 0, 16], sizes = [4, 8, 16], strides = [1, 1, 1]} : vector<4x8x48xf32> to vector<4x8x16xf32>
    %9 = vector.extract_strided_slice %6 {offsets = [0, 0, 32], sizes = [4, 8, 16], strides = [1, 1, 1]} : vector<4x8x48xf32> to vector<4x8x16xf32>
    %10 = arith.truncf %7 : vector<4x8x16xf32> to vector<4x8x16xbf16>
    %11 = arith.truncf %8 : vector<4x8x16xf32> to vector<4x8x16xbf16>
    "tpu.trace_start"() <{level = 10 : i32, message = "hqd,hkd->hqk"}> : () -> ()
    %cst_4 = arith.constant dense<0.000000e+00> : vector<4x8x8xf32>
    %12 = tpu.matmul %10, %11, %cst_4 {dimension_numbers = #tpu.dot_dimension_numbers<[2], [2], [1], [1], [0, 0, 0, 1, 1, 1], [0], [0]>} : vector<4x8x16xbf16>, vector<4x8x16xbf16>, vector<4x8x8xf32> -> vector<4x8x8xf32>
    "tpu.trace_stop"() : () -> ()
    %cst_5 = arith.constant 2.500000e-01 : f32
    %13 = vector.broadcast %cst_5 : f32 to vector<4x8x8xf32>
    %14 = arith.mulf %12, %13 : vector<4x8x8xf32>
    %15 = tpu.iota {dimensions = array<i32: 0>} : vector<8x8xi32>
    %16 = tpu.iota {dimensions = array<i32: 1>} : vector<8x8xi32>
    %17 = arith.cmpi sge, %15, %16 : vector<8x8xi32>
    %18 = vector.shape_cast %17 : vector<8x8xi1> to vector<1x8x8xi1>
    %cst_6 = arith.constant -1.000000e+30 : f32
    %19 = vector.shape_cast %18 : vector<1x8x8xi1> to vector<1x8x8xi1>
    %20 = vector.broadcast %19 : vector<1x8x8xi1> to vector<4x8x8xi1>
    %21 = vector.broadcast %cst_6 : f32 to vector<4x8x8xf32>
    %22 = arith.select %20, %14, %21 : vector<4x8x8xi1>, vector<4x8x8xf32>
    %cst_7 = arith.constant dense<0xFF800000> : vector<4x8xf32>
    %23 = vector.multi_reduction <maximumf>, %22, %cst_7 [2] : vector<4x8x8xf32> to vector<4x8xf32>
    %24 = vector.shape_cast %23 : vector<4x8xf32> to vector<4x8x1xf32>
    %25 = vector.broadcast %24 : vector<4x8x1xf32> to vector<4x8x8xf32>
    %26 = arith.subf %22, %25 : vector<4x8x8xf32>
    %27 = math.exp %26 : vector<4x8x8xf32>
    %cst_8 = arith.constant dense<0.000000e+00> : vector<4x8xf32>
    %28 = vector.multi_reduction <add>, %27, %cst_8 [2] : vector<4x8x8xf32> to vector<4x8xf32>
    %29 = vector.shape_cast %28 : vector<4x8xf32> to vector<4x8x1xf32>
    %30 = arith.truncf %27 : vector<4x8x8xf32> to vector<4x8x8xbf16>
    %31 = arith.truncf %9 : vector<4x8x16xf32> to vector<4x8x16xbf16>
    "tpu.trace_start"() <{level = 10 : i32, message = "hqk,hkd->hqd"}> : () -> ()
    %cst_9 = arith.constant dense<0.000000e+00> : vector<4x8x16xf32>
    %32 = tpu.matmul %30, %31, %cst_9 {dimension_numbers = #tpu.dot_dimension_numbers<[2], [1], [1], [2], [0, 0, 0, 1, 1, 2], [0], [0]>} : vector<4x8x8xbf16>, vector<4x8x16xbf16>, vector<4x8x16xf32> -> vector<4x8x16xf32>
    "tpu.trace_stop"() : () -> ()
    %33 = tpu.reciprocal %29 {approx = true} : vector<4x8x1xf32> -> vector<4x8x1xf32>
    %34 = vector.broadcast %33 : vector<4x8x1xf32> to vector<4x8x16xf32>
    %35 = arith.mulf %32, %34 : vector<4x8x16xf32>
    %36 = arith.truncf %35 : vector<4x8x16xf32> to vector<4x8x16xbf16>
    %c0_10 = arith.constant 0 : index
    %c0_11 = arith.constant 0 : index
    %c0_12 = arith.constant 0 : index
    %37 = vector.load %arg3[%c0_10, %c0_11, %c0_12] : memref<4x16x64xbf16, #tpu.memory_space<vmem>>, vector<4x16x64xbf16>
    "tpu.trace_start"() <{level = 10 : i32, message = "hrd,hdc->hrc"}> : () -> ()
    %cst_13 = arith.constant dense<0.000000e+00> : vector<4x8x64xf32>
    %38 = tpu.matmul %36, %37, %cst_13 {dimension_numbers = #tpu.dot_dimension_numbers<[2], [1], [1], [2], [0, 0, 0, 1, 1, 2], [0], [0]>} : vector<4x8x16xbf16>, vector<4x16x64xbf16>, vector<4x8x64xf32> -> vector<4x8x64xf32>
    "tpu.trace_stop"() : () -> ()
    %cst_14 = arith.constant dense<0.000000e+00> : vector<8x64xf32>
    %39 = vector.multi_reduction <add>, %38, %cst_14 [0] : vector<4x8x64xf32> to vector<8x64xf32>
    %c0_15 = arith.constant 0 : index
    %c0_16 = arith.constant 0 : index
    %40 = vector.load %arg4[%c0_15, %c0_16] : memref<1x64xf32, #tpu.memory_space<vmem>>, vector<1x64xf32>
    %41 = vector.broadcast %40 : vector<1x64xf32> to vector<8x64xf32>
    %42 = arith.addf %39, %41 : vector<8x64xf32>
    %c0_17 = arith.constant 0 : index
    %c0_18 = arith.constant 0 : index
    %43 = vector.load %arg5[%c0_17, %c0_18] : memref<8x64xf32, #tpu.memory_space<vmem>>, vector<8x64xf32>
    tpu.vector_store %arg5[%c0_17, %c0_18], %42 {strides = array<i32>} : memref<8x64xf32, #tpu.memory_space<vmem>>, vector<8x64xf32>,
    return
  }
  func.func @transform_0(%arg0: i32) -> (i32, i32) {
    %c0_i32 = arith.constant 0 : i32
    %c0_i32_0 = arith.constant 0 : i32
    return %arg0, %c0_i32 : i32, i32
  }
  func.func @transform_1(%arg0: i32) -> (i32, i32, i32) {
    %c0_i32 = arith.constant 0 : i32
    %c0_i32_0 = arith.constant 0 : i32
    %c0_i32_1 = arith.constant 0 : i32
    %c0_i32_2 = arith.constant 0 : i32
    return %c0_i32, %c0_i32_0, %c0_i32_1 : i32, i32, i32
  }
  func.func @transform_2(%arg0: i32) -> (i32, i32, i32) {
    %c0_i32 = arith.constant 0 : i32
    %c0_i32_0 = arith.constant 0 : i32
    %c0_i32_1 = arith.constant 0 : i32
    %c0_i32_2 = arith.constant 0 : i32
    return %c0_i32, %c0_i32_0, %c0_i32_1 : i32, i32, i32
  }
  func.func @transform_3(%arg0: i32) -> (i32, i32) {
    %c0_i32 = arith.constant 0 : i32
    %c0_i32_0 = arith.constant 0 : i32
    %c0_i32_1 = arith.constant 0 : i32
    return %c0_i32, %c0_i32_0 : i32, i32
  }
  func.func @transform_4(%arg0: i32) -> (i32, i32) {
    %c0_i32 = arith.constant 0 : i32
    %c0_i32_0 = arith.constant 0 : i32
    return %arg0, %c0_i32 : i32, i32
  }
}

</mosaic_0001>

<bundles_post_ra>
// kernel: tpu_custom_call.1
= control target key start
LH: loop header
LB: loop body
LE: loop exit
PB: predicated region body
PF: predicated region fallthrough
CT: control target
= control target key end

     0   :  { %9 = vsyncpa [#allocation3], 0  ;;  %s1910_s0 = inlined_call_operand.vmem [shape: f32[16,64], index: 0, kind: input, shape index: {}]   ;;  %s1911_s1 = inlined_call_operand.vmem [shape: bf16[4,64,48], index: 1, kind: input, shape index: {}]   ;;  %s1912_s2 = inlined_call_operand.vmem [shape: bf16[4,16,64], index: 2, kind: input, shape index: {}]   ;;  %s1913_s3 = inlined_call_operand.vmem [shape: f32[1,64], index: 3, kind: input, shape index: {}]   ;;  %s1914_s4 = inlined_call_operand.hbm [shape: f32[16,64], index: 4, kind: output, shape index: {}]  }
   0x1   :  { %11 = vsyncpa [#allocation3 + $0x1], 0  ;;  %s1627_s15 = smov 0   ;;  %s1629_s16 = smov 0  }
   0x2   :  { %s1631_s17 = smov 0   ;;  %s1633_s18 = smov 0  }
   0x3 LB: > { %s1648_s19 = sadd.s32 4294967295, %s1595_s18   ;;  %s1243_s20 = sadd.s32 4294967294, %s1595_s18   ;;  %s1595_s18 = sphi %s1633_s18, %s1920_s18   ;;  %s1591_s17 = sphi %s1631_s17, %s1919_s17   ;;  %s1587_s16 = sphi %s1629_s16, %s1918_s16   ;;  %s1583_s15 = sphi %s1627_s15, %s1917_s15  }
   0x4   : > { %s1652_s21 = sadd.s32 1, %s1595_s18   ;;  %s113_s22 = sadd.s32 1, %s1591_s17 }
   0x5   : > { %s110_s23 = ssub.s32 %s1595_s18, %s1652_s21  ;;  %p123_p0 = scmp.ne.s32.totalorder %s1591_s17, %s1587_s16 }
   0x6   : > { %p111_p1 = scmp.eq.s32.totalorder %s110_s23, 0  ;;  %p124_p2 = scmp.eq.s32.totalorder %s1648_s19, 1 }
   0x7   : > { %p129_p3 = scmp.ne.s32.totalorder %s1587_s16, %s1583_s15  ;;  %p130_p4 = scmp.eq.s32.totalorder %s1243_s20, 1 }
   0x8   : > { %s1663_s24 = scalar_select %p111_p1, %s1591_s17, %s113_s22  }
   0x9   : > { %p1665_p5 = por %p124_p2, %p123_p0  ;;  %p1669_p6 = por %p130_p4, %p129_p3 }
   0xa   : > { %p1246_p7 = scmp.ge.s32.totalorder %s1595_s18, 1  ;;  %p164_p8 = scmp.lt.s32.totalorder %s1595_s18, 3 }
   0xc   : > { %p165_p9 = pnand %p1246_p7, %p164_p8 }
   0xd   : > { %v1497_v0 = vld [vmem:[%s1911_s1] sm:$0xff] (!%p165_p9)   ;;  %v1597_v1 = vmov (!%p165_p9), 0.0   ;;  %v1499_v3 = vld [vmem:[%s1911_s1 + $0x8] sm:$0xff] (!%p165_p9)   ;;  %vm1598_vm0 = vmmov (!%p165_p9), 0   ;;  %p189_p10 = scmp.lt.s32.totalorder (!%p165_p9), %s1648_s19, 1  ;;  %v1501_v5 = vld [vmem:[%s1911_s1 + $0x10] sm:$0xff] (!%p165_p9)   ;;  %v693_v49 = vlaneseq (!%p165_p9) }
   0xe   : > { %168 = sbr.rel (%p165_p9) target bundleno = 1209 (0x4b9), region = 36  ;;  %1334 = vmatprep.subr.bf16.mxu0 (!%p165_p9), %v1597_v1  ;;  %1346 = vmatprep.subr.bf16.mxu1 (!%p165_p9), %v1597_v1  ;;  %v1498_v2 = vld [vmem:[%s1911_s1 + $0x20] sm:$0xff] (!%p165_p9)   ;;  %v1500_v4 = vld [vmem:[%s1911_s1 + $0x28] sm:$0xff] (!%p165_p9)   ;;  %v1502_v6 = vld [vmem:[%s1911_s1 + $0x30] sm:$0xff] (!%p165_p9)   ;;  %vm252_vm1 = vcmask (!%p165_p9), 523264   ;;  %s1599_s30 = smov (!%p165_p9), 112  }
   0xf   : > { %1335 = vmatpush3.bf16.msra.mxu0 (!%p165_p9), %v1497_v0  ;;  %1342 = vmatprep.mubr.msk.bf16.mxu0 (!%p165_p9), %vm1598_vm0, %v1597_v1  ;;  %v1503_v7 = vld [vmem:[%s1911_s1 + $0x18] sm:$0xff] (!%p165_p9)   ;;  %v1505_v11 = vld [vmem:[%s1911_s1 + $0x40] sm:$0xff] (!%p165_p9)   ;;  %v1507_v13 = vld [vmem:[%s1911_s1 + $0x48] sm:$0xff] (!%p165_p9)   ;;  %s1600_s5 = smov (!%p165_p9), 96   ;;  %vm495_vm2 = vcmask (!%p165_p9), 130048   ;;  %vm750_vm3 = vcmask (!%p165_p9), 1043456  }
  0x10   : > { %1347 = vmatpush3.bf16.msra.mxu1 (!%p165_p9), %v1498_v2  ;;  %1336 = vmatprep.subr.bf16.mxu0 (!%p165_p9), %v1597_v1  ;;  %v1504_v9 = vld [vmem:[%s1911_s1 + $0x38] sm:$0xff] (!%p165_p9)   ;;  %v1506_v12 = vld [vmem:[%s1911_s1 + $0x60] sm:$0xff] (!%p165_p9)   ;;  %v1508_v14 = vld [vmem:[%s1911_s1 + $0x68] sm:$0xff] (!%p165_p9)   ;;  %v694_v50 = vshrl.u32 (!%p165_p9), %v693_v49, 7  ;;  %v696_v51 = vand.u32 (!%p165_p9), 127, %v693_v49  ;;  %vm704_vm5 = vcmask (!%p165_p9), 64512  }
  0x11   : > { %1348 = vmatprep.subr.bf16.mxu1 (!%p165_p9), %v1597_v1  ;;  %1354 = vmatprep.mubr.msk.bf16.mxu1 (!%p165_p9), %vm1598_vm0, %v1597_v1  ;;  %v1509_v15 = vld [vmem:[%s1911_s1 + $0x50] sm:$0xff] (!%p165_p9)   ;;  %v1511_v17 = vld [vmem:[%s1911_s1 + $0x58] sm:$0xff] (!%p165_p9)   ;;  %s186_s14 = sand.u32 (!%p165_p9), 1, %s1587_s16   ;;  %s1287_s27 = sshll.u32 (!%p165_p9), %s1648_s19, 7 }
  0x12   : > { %v1510_v16 = vld [vmem:[%s1911_s1 + $0x70] sm:$0xff] (!%p165_p9)   ;;  %v1512_v18 = vld [vmem:[%s1911_s1 + $0x78] sm:$0xff] (!%p165_p9)   ;;  %vm697_vm4 = vcmp.ge.s32.totalorder (!%p165_p9), %v694_v50, %v696_v51  ;;  %s1247_s20 = sshll.u32 (!%p165_p9), %s186_s14, 3  ;;  %s1867_s6 = scalar_lea.hbm (!%p165_p9), %s1914_s4, %s1287_s27 }
  0x13   : > { %1337 = vmatpush3.bf16.msra.mxu0 (!%p165_p9), %v1499_v3  ;;  %s188_s28 = scalar_lea.vmem (!%p165_p9), [#allocation2], %s1247_s20  ;;  %s1171_s7 = scalar_lea.sflag (!%p165_p9), [#allocation3], %s186_s14 }
  0x14   : > { %1349 = vmatpush3.bf16.msra.mxu1 (!%p165_p9), %v1500_v4  ;;  %1338 = vmatprep.subr.bf16.mxu0 (!%p165_p9), %v1597_v1  ;;  %s1184_s29 = sshll.u32 (!%p165_p9), %s188_s28, 4  ;;  %s1601_s8 = smov (!%p165_p9), [#allocation2]   ;;  %s1869_s29 = int_to_ptr.vmem [resolvable:$true] %s1184_s29 }
  0x15   : > { %s190_s9 = scalar_select %p189_p10, %s1648_s19, 1  ;;  %1350 = vmatprep.subr.bf16.mxu1 %v1597_v1 }
  0x16   : > { %s1533_s19 = scalar_lea.vmem %s1869_s29, 128 }
  0x17   : > { %s1248_s12 = sshll.u32 %s190_s9, 3  ;;  %1339 = vmatpush3.bf16.msra.mxu0 %v1501_v5  ;;  %p1534_p11 = scmp.ne.s32.totalorder %s1869_s29, %s1533_s19 }
  0x18   : > { %s192_s23 = scalar_lea.vmem %s1910_s0, %s1248_s12  ;;  %1351 = vmatpush3.bf16.msra.mxu1 %v1502_v6  ;;  %1340 = vmatprep.subr.bf16.mxu0 %v1597_v1  ;;  %s1537_s9 = sshll.u32 %s1601_s8, 4  ;;  %s1538_s9 = int_to_ptr.vmem [resolvable:$false] %s1537_s9 }
  0x19   : > { %v194_v8 = vld [vmem:[%s192_s23] sm:$0xff]  ;;  %1352 = vmatprep.subr.bf16.mxu1 %v1597_v1  ;;  %p1535_p12 = pnand %p1534_p11, %p1665_p5  ;;  %s1539_s10 = scalar_lea.vmem %s1538_s9, 256 }
  0x1a   : > { %v195_v10 = vpack.c.bf16 %v194_v8, %v194_v8  ;;  %p1540_p0 = scmp.lt.s32.totalorder %s1869_s29, %s1538_s9  ;;  %p1541_p1 = scmp.lt.s32.totalorder %s1539_s10, %s1533_s19 }
  0x1b   : > { %1341 = vmatpush3.bf16.msra.mxu0 %v1503_v7  ;;  %p1536_p13 = pneg %p1535_p12 }
  0x1c   : > { %1353 = vmatpush3.bf16.msra.mxu1 %v1504_v9  ;;  %1358 = vmatprep.subr.bf16.mxu0 %v1597_v1  ;;  %p1542_p2 = por %p1541_p1, %p1540_p0 }
  0x1d   : > { %1370 = vmatprep.subr.bf16.mxu1 %v1597_v1 }
  0x1e   : > { %1343 = vmatmul.mubr.msk.bf16.vlgmr.msra.gmra.mrb[0].mxu0 %vm252_vm1, %v195_v10  ;;  %p1543_p3 = pnand %p1542_p2, %p1536_p13 }
  0x1f   : > { %1359 = vmatpush3.bf16.msra.mxu0 %v1505_v11  ;;  %1355 = vmatmul.mubr.msk.bf16.vlgmr.msra.gmra.mrb[0].mxu1 %vm252_vm1, %v195_v10 }
  0x20   : > { %1371 = vmatpush3.bf16.msra.mxu1 %v1506_v12  ;;  %1360 = vmatprep.subr.bf16.mxu0 %v1597_v1 }
  0x21   : > { %1372 = vmatprep.subr.bf16.mxu1 %v1597_v1  ;;  %1366 = vmatprep.mubr.msk.bf16.mxu0 %vm1598_vm0, %v1597_v1 }
  0x22   : > { %1378 = vmatprep.mubr.msk.bf16.mxu1 %vm1598_vm0, %v1597_v1 }
  0x23   : > { %1361 = vmatpush3.bf16.msra.mxu0 %v1507_v13 }
  0x24   : > { %1373 = vmatpush3.bf16.msra.mxu1 %v1508_v14  ;;  %1362 = vmatprep.subr.bf16.mxu0 %v1597_v1 }
  0x25   : > { %1374 = vmatprep.subr.bf16.mxu1 %v1597_v1 }
  0x27   : > { %1363 = vmatpush3.bf16.msra.mxu0 %v1509_v15 }
  0x28   : > { %1375 = vmatpush3.bf16.msra.mxu1 %v1510_v16  ;;  %1364 = vmatprep.subr.bf16.mxu0 %v1597_v1 }
  0x29   : > { %1376 = vmatprep.subr.bf16.mxu1 %v1597_v1 }
  0x2b   : > { %1365 = vmatpush3.bf16.msra.mxu0 %v1511_v17 }
  0x2c   : > { %1377 = vmatpush3.bf16.msra.mxu1 %v1512_v18  ;;  %1382 = vmatprep.subr.bf16.mxu0 %v1597_v1 }
  0x2d   : > { %1388 = vmatprep.subr.bf16.mxu1 %v1597_v1 }
  0x2e   : > { %1367 = vmatmul.mubr.msk.bf16.vlgmr.msra.gmra.mrb[4].mxu0 %vm252_vm1, %v195_v10 }
  0x2f   : > { %1379 = vmatmul.mubr.msk.bf16.vlgmr.msra.gmra.mrb[4].mxu1 %vm252_vm1, %v195_v10  ;;  %1384 = vmatprep.mubr.msk.bf16.mxu0 %vm1598_vm0, %v1597_v1 }
  0x30   : > { %1390 = vmatprep.mubr.msk.bf16.mxu1 %vm1598_vm0, %v1597_v1 }
  0xf1   : > { %v290_v19 = vpop.f32.mrb[0].mxu0 }
  0xf2   : > { %v488_v20 = vpack.c.bf16 %v290_v19, %v290_v19  ;;  %v1344_v21 = vpop.f32.mrb[1].mxu0  ;;  %v354_v22 = vpop.f32.mrb[0].mxu1 }
  0xf3   : > { %v293_v23 = vpop.f32.mrb[2].mxu0  ;;  %v1356_v24 = vpop.f32.mrb[1].mxu1  ;;  %v1762_v25 = vpack.c.bf16 %v354_v22, %v354_v22 }
  0xf4   : > { %493 = vrot.lane.b32.xlu0 %v488_v20, %s1599_s30  ;;  %v1345_v26 = vpop.f32.mrb[3].mxu0  ;;  %v357_v27 = vpop.f32.mrb[2].mxu1 }
  0xf5   : > { %v1357_v28 = vpop.f32.mrb[3].mxu1 }
  0xf8   : > { %543 = vrot.lane.b32.xlu0 %v1762_v25, %s1599_s30 }
 0x101   : > { %v418_v29 = vpop.f32.mrb[4].mxu0 }
 0x102   : > { %v1765_v30 = vpack.c.bf16 %v418_v29, %v418_v29  ;;  %v1368_v31 = vpop.f32.mrb[5].mxu0  ;;  %v482_v32 = vpop.f32.mrb[4].mxu1 }
 0x103   : > { %v421_v33 = vpop.f32.mrb[6].mxu0  ;;  %v1380_v34 = vpop.f32.mrb[5].mxu1  ;;  %v1767_v35 = vpack.c.bf16 %v482_v32, %v482_v32 }
 0x104   : > { %v485_v36 = vpop.f32.mrb[6].mxu1  ;;  %592 = vrot.lane.b32.xlu1 %v1765_v30, %s1599_s30  ;;  %v1369_v37 = vpop.f32.mrb[7].mxu0 }
 0x105   : > { %v1381_v38 = vpop.f32.mrb[7].mxu1 }
 0x108   : > { %641 = vrot.lane.b32.xlu1 %v1767_v35, %s1599_s30 }
 0x10c   : > { %745 = vrot.lane.b32.xlu1 %v488_v20, %s1600_s5 }
 0x166   : > { %v494_v39 = vpop.permute.xlu0 %493 }
 0x167   : > { %v500_v40 = vsel %vm495_vm2, %v494_v39, 0 }
 0x168   : > { %1383 = vmatpush3.bf16.xpose.msra.mxu0 %v500_v40 }
 0x169   : > { %1394 = vmatprep.subr.bf16.mxu0 %v1597_v1 }
 0x16a   : > { %v544_v41 = vpop.permute.xlu0 %543 }
 0x16b   : > { %v549_v42 = vsel %vm495_vm2, %v544_v41, 0 }
 0x16c   : > { %1389 = vmatpush3.bf16.xpose.msra.mxu1 %v549_v42 }
 0x16d   : > { %1400 = vmatprep.subr.bf16.mxu1 %v1597_v1 }
 0x16f   : > { %1385 = vmatmul.mubr.msk.bf16.vlgmr.msra.gmra.mrb[8].mxu0 %vm495_vm2, %v488_v20 }
 0x170   : > { %1396 = vmatprep.mubr.msk.bf16.mxu0 %vm1598_vm0, %v1597_v1 }
 0x173   : > { %1391 = vmatmul.mubr.msk.bf16.vlgmr.msra.gmra.mrb[8].mxu1 %vm495_vm2, %v1762_v25 }
 0x174   : > { %1402 = vmatprep.mubr.msk.bf16.mxu1 %vm1598_vm0, %v1597_v1 }
 0x176   : > { %v593_v43 = vpop.permute.xlu1 %592 }
 0x177   : > { %v598_v44 = vsel %vm495_vm2, %v593_v43, 0 }
 0x178   : > { %1395 = vmatpush3.bf16.xpose.msra.mxu0 %v598_v44 }
 0x179   : > { %1406 = vmatprep.subr.bf16.mxu0 %v1597_v1 }
 0x17a   : > { %v642_v45 = vpop.permute.xlu1 %641 }
 0x17b   : > { %v647_v46 = vsel %vm495_vm2, %v642_v45, 0 }
 0x17c   : > { %1401 = vmatpush3.bf16.xpose.msra.mxu1 %v647_v46 }
 0x17d   : > { %1412 = vmatprep.subr.bf16.mxu1 %v1597_v1 }
 0x17e   : > { %v746_v47 = vpop.permute.xlu1 %745 }
 0x17f   : > { %v752_v48 = vsel %vm750_vm3, %v746_v47, 0  ;;  %1397 = vmatmul.mubr.msk.bf16.vlgmr.msra.gmra.mrb[12].mxu0 %vm495_vm2, %v1765_v30  ;;  %v1513_v47 = vld [vmem:[%s1912_s2] sm:$0xff]  }
 0x180   : > { %1407 = vmatpush3.bf16.msra.mxu0 %v752_v48  ;;  %1408 = vmatprep.mubr.msk.bf16.mxu0 %vm1598_vm0, %v1597_v1  ;;  %v1514_v48 = vld [vmem:[%s1912_s2 + $0x8] sm:$0xff]  }
 0x181   : > { %1418 = vmatprep.subr.bf16.mxu0 %v1597_v1 }
 0x183   : > { %1403 = vmatmul.mubr.msk.bf16.vlgmr.msra.gmra.mrb[12].mxu1 %vm495_vm2, %v1767_v35 }
 0x184   : > { %1414 = vmatprep.mubr.msk.bf16.mxu1 %vm1598_vm0, %v1597_v1 }
 0x242   : > { %v536_v52 = vpop.f32.mrb[8].mxu0 }
 0x243   : > { %v689_v53 = vmul.f32 0.25, %v536_v52  ;;  %v1386_v54 = vpop.f32.mrb[9].mxu0 }
 0x244   : > { %v539_v55 = vpop.f32.mrb[10].mxu0 }
 0x245   : > { %v1387_v56 = vpop.f32.mrb[11].mxu0  ;;  %v700_v57 = vsel %vm697_vm4, %v689_v53, -1e+30 }
 0x246   : > { %v585_v58 = vpop.f32.mrb[8].mxu1  ;;  %v705_v59 = vsel %vm704_vm5, %v700_v57, -inf }
 0x247   : > { %v690_v60 = vmul.f32 0.25, %v585_v58  ;;  %v1392_v61 = vpop.f32.mrb[9].mxu1  ;;  %706 = vmax.xlane.f32.xlu0 %v705_v59 }
 0x248   : > { %v588_v62 = vpop.f32.mrb[10].mxu1 }
 0x249   : > { %v1393_v63 = vpop.f32.mrb[11].mxu1  ;;  %v701_v0 = vsel %vm697_vm4, %v690_v60, -1e+30 }
 0x24a   : > { %v708_v2 = vsel %vm704_vm5, %v701_v0, -inf }
 0x24b   : > { %709 = vmax.xlane.f32.xlu1 %v708_v2 }
 0x252   : > { %v634_v3 = vpop.f32.mrb[12].mxu0 }
 0x253   : > { %v691_v4 = vmul.f32 0.25, %v634_v3  ;;  %v1398_v5 = vpop.f32.mrb[13].mxu0  ;;  %v1516_v3 = vld [vmem:[%s1912_s2 + $0x18] sm:$0xff]  }
 0x254   : > { %v637_v6 = vpop.f32.mrb[14].mxu0 }
 0x255   : > { %v1399_v7 = vpop.f32.mrb[15].mxu0  ;;  %v702_v8 = vsel %vm697_vm4, %v691_v4, -1e+30 }
 0x256   : > { %v683_v9 = vpop.f32.mrb[12].mxu1  ;;  %v711_v10 = vsel %vm704_vm5, %v702_v8, -inf }
 0x257   : > { %v692_v11 = vmul.f32 0.25, %v683_v9  ;;  %v1404_v12 = vpop.f32.mrb[13].mxu1  ;;  %712 = vmax.xlane.f32.xlu0 %v711_v10 }
 0x258   : > { %v686_v13 = vpop.f32.mrb[14].mxu1 }
 0x259   : > { %v1405_v14 = vpop.f32.mrb[15].mxu1  ;;  %v703_v15 = vsel %vm697_vm4, %v692_v11, -1e+30 }
 0x25a   : > { %v714_v16 = vsel %vm704_vm5, %v703_v15, -inf }
 0x25b   : > { %715 = vmax.xlane.f32.xlu0 %v714_v16 }
 0x25c   : > { %842 = vrot.lane.b32.xlu1 %v1765_v30, %s1600_s5 }
 0x260   : > { %890 = vrot.lane.b32.xlu1 %v1767_v35, %s1600_s5 }
 0x271   : > { %794 = vrot.lane.b32.xlu0 %v1762_v25, %s1600_s5 }
 0x2d4   : > { %v707_v17 = vpop.xlane.xlu0 %706 }
 0x2d5   : > { %v717_v18 = vsub.f32 %v700_v57, %v707_v17  ;;  %v1515_v57 = vld [vmem:[%s1912_s2 + $0x10] sm:$0xff]  }
 0x2d7   : > { %v721_v19 = vmul.f32 1.442695, %v717_v18 }
 0x2d8   : > { %v710_v20 = vpop.xlane.xlu1 %709 }
 0x2d9   : > { %1517 = vpow2.f32 %v721_v19  ;;  %v718_v21 = vsub.f32 %v701_v0, %v710_v20 }
 0x2db   : > { %v723_v22 = vmul.f32 1.442695, %v718_v21 }
 0x2dc   : > { %v843_v24 = vpop.permute.xlu1 %842 }
 0x2dd   : > { %1519 = vpow2.f32 %v723_v22  ;;  %v848_v30 = vsel %vm750_vm3, %v843_v24, 0 }
 0x2e0   : > { %v891_v38 = vpop.permute.xlu1 %890 }
 0x2e1   : > { %v896_v40 = vsel %vm750_vm3, %v891_v38, 0  ;;  %v1285_v38 = vld [vmem:[%s1913_s3] ss:$0 sm:$0xff] }
 0x2e3   : > { %v1518_v23 = vpop.eup %1517 }
 0x2e4   : > { %v713_v26 = vpop.xlane.xlu0 %712  ;;  %v729_v27 = vsel %vm704_vm5, %v1518_v23, 0.0  ;;  %v741_v28 = vpack.c.bf16 %v1518_v23, %v1518_v23 }
 0x2e5   : > { %v719_v29 = vsub.f32 %v702_v8, %v713_v26  ;;  %730 = vadd.xlane.f32.xlu0 %v729_v27 }
 0x2e6   : > { %1409 = vmatmul.mubr.msk.bf16.vlgmr.msra.gmra.mrb[16].mxu0 %vm704_vm5, %v741_v28 }
 0x2e7   : > { %v1520_v25 = vpop.eup %1519  ;;  %v725_v31 = vmul.f32 1.442695, %v719_v29  ;;  %1419 = vmatpush3.bf16.msra.mxu0 %v848_v30  ;;  %1420 = vmatprep.mubr.msk.bf16.mxu0 %vm1598_vm0, %v1597_v1 }
 0x2e8   : > { %v716_v32 = vpop.xlane.xlu0 %715  ;;  %v732_v33 = vsel %vm704_vm5, %v1520_v25, 0.0  ;;  %1430 = vmatprep.subr.bf16.mxu0 %v1597_v1  ;;  %v742_v39 = vpack.c.bf16 %v1520_v25, %v1520_v25 }
 0x2e9   : > { %1521 = vpow2.f32 %v725_v31  ;;  %v720_v34 = vsub.f32 %v703_v15, %v716_v32  ;;  %733 = vadd.xlane.f32.xlu1 %v732_v33 }
 0x2eb   : > { %v727_v35 = vmul.f32 1.442695, %v720_v34 }
 0x2ec   : > { %v795_v36 = vpop.permute.xlu0 %794 }
 0x2ed   : > { %1523 = vpow2.f32 %v727_v35  ;;  %v800_v37 = vsel %vm750_vm3, %v795_v36, 0 }
 0x2ee   : > { %1413 = vmatpush3.bf16.msra.mxu1 %v800_v37 }
 0x2ef   : > { %1424 = vmatprep.subr.bf16.mxu1 %v1597_v1 }
 0x2f1   : > { %1415 = vmatmul.mubr.msk.bf16.vlgmr.msra.gmra.mrb[16].mxu1 %vm704_vm5, %v742_v39 }
 0x2f2   : > { %1425 = vmatpush3.bf16.msra.mxu1 %v896_v40  ;;  %1426 = vmatprep.mubr.msk.bf16.mxu1 %vm1598_vm0, %v1597_v1 }
 0x2f3   : > { %v1522_v41 = vpop.eup %1521  ;;  %1436 = vmatprep.subr.bf16.mxu1 %v1597_v1 }
 0x2f4   : > { %v735_v42 = vsel %vm704_vm5, %v1522_v41, 0.0  ;;  %v743_v43 = vpack.c.bf16 %v1522_v41, %v1522_v41 }
 0x2f5   : > { %736 = vadd.xlane.f32.xlu0 %v735_v42 }
 0x2f6   : > { %1421 = vmatmul.mubr.msk.bf16.vlgmr.msra.gmra.mrb[20].mxu0 %vm704_vm5, %v743_v43 }
 0x2f7   : > { %v1524_v44 = vpop.eup %1523  ;;  %1432 = vmatprep.mubr.msk.bf16.mxu0 %vm1598_vm0, %v1597_v1  ;;  %1431 = vmatpush3.bf16.msra.mxu0 %v1513_v47 }
 0x2f8   : > { %v738_v45 = vsel %vm704_vm5, %v1524_v44, 0.0  ;;  %v744_v46 = vpack.c.bf16 %v1524_v44, %v1524_v44  ;;  %1442 = vmatprep.subr.bf16.mxu0 %v1597_v1 }
 0x2f9   : > { %739 = vadd.xlane.f32.xlu0 %v738_v45 }
 0x2fa   : > { %1427 = vmatmul.mubr.msk.bf16.vlgmr.msra.gmra.mrb[20].mxu1 %vm704_vm5, %v744_v46 }
 0x2fb   : > { %1438 = vmatprep.mubr.msk.bf16.mxu1 %vm1598_vm0, %v1597_v1  ;;  %1437 = vmatpush3.bf16.msra.mxu1 %v1514_v48 }
 0x2fc   : > { %1448 = vmatprep.subr.bf16.mxu1 %v1597_v1 }
 0x372   : > { %v731_v49 = vpop.xlane.xlu0 %730 }
 0x373   : > { %1525 = vrcp.f32 %v731_v49 }
 0x376   : > { %v734_v50 = vpop.xlane.xlu1 %733 }
 0x377   : > { %1527 = vrcp.f32 %v734_v50 }
 0x37d   : > { %v1526_v51 = vpop.eup %1525 }
 0x381   : > { %v1528_v61 = vpop.eup %1527 }
 0x382   : > { %v737_v53 = vpop.xlane.xlu0 %736 }
 0x383   : > { %1529 = vrcp.f32 %v737_v53 }
 0x386   : > { %v740_v60 = vpop.xlane.xlu0 %739 }
 0x387   : > { %1531 = vrcp.f32 %v740_v60 }
 0x38d   : > { %v1530_v6 = vpop.eup %1529 }
 0x391   : > { %v1532_v13 = vpop.eup %1531 }
 0x3b9   : > { %v788_v52 = vpop.f32.mrb[16].mxu0 }
 0x3ba   : > { %v942_v54 = vmul.f32 %v1526_v51, %v788_v52  ;;  %v1410_v55 = vpop.f32.mrb[17].mxu0 }
 0x3bb   : > { %v791_v56 = vpop.f32.mrb[18].mxu0 }
 0x3bc   : > { %v946_v58 = vpack.c.bf16 %v942_v54, %v942_v54  ;;  %v1411_v59 = vpop.f32.mrb[19].mxu0 }
 0x3be   : > { %1433 = vmatmul.mubr.msk.bf16.vlgmr.msra.gmra.mrb[24].mxu0 %vm495_vm2, %v946_v58 }
 0x3bf   : > { %1443 = vmatpush3.bf16.msra.mxu0 %v1515_v57  ;;  %1444 = vmatprep.mubr.msk.bf16.mxu0 %vm1598_vm0, %v1597_v1 }
 0x3c4   : > { %v836_v62 = vpop.f32.mrb[16].mxu1 }
 0x3c5   : > { %v943_v63 = vmul.f32 %v1528_v61, %v836_v62  ;;  %v1416_v0 = vpop.f32.mrb[17].mxu1 }
 0x3c6   : > { %v839_v2 = vpop.f32.mrb[18].mxu1 }
 0x3c7   : > { %v947_v4 = vpack.c.bf16 %v943_v63, %v943_v63  ;;  %v1417_v5 = vpop.f32.mrb[19].mxu1 }
 0x3c9   : > { %v884_v7 = vpop.f32.mrb[20].mxu0  ;;  %1439 = vmatmul.mubr.msk.bf16.vlgmr.msra.gmra.mrb[24].mxu1 %vm495_vm2, %v947_v4 }
 0x3ca   : > { %v944_v8 = vmul.f32 %v1530_v6, %v884_v7  ;;  %v1422_v9 = vpop.f32.mrb[21].mxu0  ;;  %1449 = vmatpush3.bf16.msra.mxu1 %v1516_v3  ;;  %1450 = vmatprep.mubr.msk.bf16.mxu1 %vm1598_vm0, %v1597_v1 }
 0x3cb   : > { %v887_v10 = vpop.f32.mrb[22].mxu0 }
 0x3cc   : > { %v948_v11 = vpack.c.bf16 %v944_v8, %v944_v8  ;;  %v1423_v12 = vpop.f32.mrb[23].mxu0 }
 0x3cd   : > { %v932_v14 = vpop.f32.mrb[20].mxu1 }
 0x3ce   : > { %v945_v15 = vmul.f32 %v1532_v13, %v932_v14  ;;  %v1428_v16 = vpop.f32.mrb[21].mxu1  ;;  %1445 = vmatmul.mubr.msk.bf16.vlgmr.msra.gmra.mrb[28].mxu0 %vm495_vm2, %v948_v11 }
 0x3cf   : > { %v935_v17 = vpop.f32.mrb[22].mxu1 }
 0x3d0   : > { %v949_v18 = vpack.c.bf16 %v945_v15, %v945_v15  ;;  %v1429_v19 = vpop.f32.mrb[23].mxu1 }
 0x3d2   : > { %1451 = vmatmul.mubr.msk.bf16.vlgmr.msra.gmra.mrb[28].mxu1 %vm495_vm2, %v949_v18 }
 0x491   : > { %v1001_v20 = vpop.f32.mrb[24].mxu0 }
 0x492   : > { %v1434_v21 = vpop.f32.mrb[25].mxu0  ;;  %v1154_v24 = vsel %vm252_vm1, %v1001_v20, 0.0 }
 0x493   : > { %v1004_v22 = vpop.f32.mrb[26].mxu0 }
 0x494   : > { %v1435_v23 = vpop.f32.mrb[27].mxu0 }
 0x49c   : > { %v1050_v1 = vpop.f32.mrb[24].mxu1 }
 0x49d   : > { %v1155_v26 = vsel %vm252_vm1, %v1050_v1, 0.0  ;;  %v1440_v27 = vpop.f32.mrb[25].mxu1 }
 0x49e   : > { %v1156_v28 = vadd.f32 %v1155_v26, %v1154_v24  ;;  %v1053_v29 = vpop.f32.mrb[26].mxu1 }
 0x49f   : > { %v1441_v30 = vpop.f32.mrb[27].mxu1 }
 0x4a1   : > { %v1099_v25 = vpop.f32.mrb[28].mxu0 }
 0x4a2   : > { %v1157_v31 = vsel %vm252_vm1, %v1099_v25, 0.0  ;;  %v1446_v32 = vpop.f32.mrb[29].mxu0 }
 0x4a3   : > { %v1158_v33 = vadd.f32 %v1157_v31, %v1156_v28  ;;  %v1102_v34 = vpop.f32.mrb[30].mxu0 }
 0x4a4   : > { %v1447_v35 = vpop.f32.mrb[31].mxu0 }
 0x4a5   : > { %v1148_v36 = vpop.f32.mrb[28].mxu1 }
 0x4a6   : > { %v1159_v37 = vsel %vm252_vm1, %v1148_v36, 0.0  ;;  %v1452_v39 = vpop.f32.mrb[29].mxu1 }
 0x4a7   : > { %v1160_v40 = vadd.f32 %v1159_v37, %v1158_v33  ;;  %v1151_v41 = vpop.f32.mrb[30].mxu1 }
 0x4a8   : > { %v1453_v42 = vpop.f32.mrb[31].mxu1 }
 0x4a9   : > { %v1168_v43 = vadd.f32 %v1285_v38, %v1160_v40 }
 0x4ab   : > { %1169 = vst.msk [vmem:[%s188_s28] sm:$0xff] %vm252_vm1, %v1168_v43 }
 0x4ac   : > { %1546 = shalt.err (!%p1543_p3)
}
 0x4ad   : > { %s1547_s11 = scalar_lea.hbm %s1867_s6, 128  ;;  %s1551_s14 = scalar_lea.hbm %s1914_s4, 256 }
 0x4ae   : > { %p1548_p4 = scmp.ne.s32.totalorder %s1867_s6, %s1547_s11  ;;  %p1552_p9 = scmp.lt.u32.totalorder %s1867_s6, %s1914_s4 }
 0x4af   : > { %p1553_p10 = scmp.lt.u32.totalorder %s1551_s14, %s1547_s11  ;;  %p1555_p12 = scmp.lt.u32.totalorder %s1547_s11, %s1867_s6 }
 0x4b0   : > { %p1549_p7 = pnand %p1548_p4, %p1665_p5 }
 0x4b1   : > { %p1554_p11 = por %p1553_p10, %p1552_p9 }
 0x4b2   : > { %p1550_p8 = pneg %p1549_p7 }
 0x4b3   : > { %p1556_p13 = por %p1555_p12, %p1554_p11 }
 0x4b5   : > { %p1557_p0 = pnand %p1556_p13, %p1550_p8 }
 0x4b7   : > { %1560 = shalt.err (!%p1557_p0)
}
 0x4b8   : > { %1454 = dma.vmem_to_hbm [thread:$0]  (%p1665_p5), %s1869_s29, 128, %s1867_s6, %s1171_s7  }
 0x4b9 PF: > { %p1460_p1 = scmp.ge.s32.totalorder %s1595_s18, 2  ;;  %s1196_s23 = sand.u32 1, %s1583_s15  }
 0x4ba   : > { %s1197_s27 = scalar_lea.sflag [#allocation3], %s1196_s23 }
 0x4bb   : > { %p1457_p2 = pnand %p1460_p1, %p1669_p6 }
 0x4bd   : > { %1578 = dma.done.wait (!%p1457_p2), %s1197_s27, 128  }
 0x4be   : > { %1580 = vsyncadd (!%p1457_p2), %s1197_s27, 4294967168  ;;  %p14_p3 = scmp.ge.s32.totalorder %s1652_s21, 4   ;;  %s1917_s15 = smov %s1587_s16 }
 0x4bf   : > { %s1918_s16 = smov %s1591_s17  ;;  %s1919_s17 = smov %s1663_s24 }
 0x4c0   : > { %s1920_s18 = smov %s1652_s21  ;;  %16 = sbr.rel (!%p14_p3) target bundleno = 3 (0x3), region = 71 }
 0x4c7   :  { %1202 = vsyncpa [#allocation3], 1 }
 0x4c8   :  { %1204 = vsyncpa [#allocation3 + $0x1], 1 }

</bundles_post_ra>
